<compile_context>
chip_gen: v5e
topology: v5e:2x2
jax: 0.10.0
libtpu: 0.0.40
codegen_flags: <defaults>
</compile_context>

<pallas_src>
import functools
import math

import jax
import jax.numpy as jnp
from jax.experimental import pallas as pl
from jax.experimental.pallas import tpu as pltpu

# Below this many std elements a plain XLA fusion beats a pallas_call.
_SMALL_BYPASS_ELEMENTS = 1 << 16


def _normal_head_kernel(x_ref, mean_ref, std_ref, *, num_outputs, raw_init_std, min_std):
    """mean = x[:, :A]; std = softplus(x[:, A:] + raw_init_std) + min_std (f32 math)."""
    A = num_outputs
    # mean is a straight in-register copy of the left half of the block.
    mean_ref[...] = x_ref[:, :A]
    # raw_std half, computed in f32 regardless of the storage dtype.
    z = x_ref[:, A:].astype(jnp.float32) + raw_init_std
    # Numerically stable softplus: max(z, 0) + log1p(exp(-|z|)).
    sp = jnp.maximum(z, 0.0) + jnp.log1p(jnp.exp(-jnp.abs(z)))
    std_ref[...] = (sp + min_std).astype(std_ref.dtype)


def _target_tile_bytes():
    """~2 MiB tiles everywhere; ~4 MiB on v7x (higher HBM BW amortizes grid-step cost)."""
    try:
        kind = jax.devices()[0].device_kind.lower()
    except Exception:  # pragma: no cover - defensive; default is always safe.
        return 2 << 20
    if "v7" in kind:
        return 4 << 20
    return 2 << 20


def _pick_tile_rows(rows, per_row_bytes, sublane_mult, target_tile_bytes):
    """Row-block size: multiple of the packed sublane count, bounded by target bytes."""
    cap = (target_tile_bytes // max(per_row_bytes, 1)) // sublane_mult * sublane_mult
    cap = max(sublane_mult, cap)
    if rows <= cap:
        # Whole problem fits one tile: split into two balanced blocks when that is
        # cheap/legal so both v7x TensorCores get work (harmless on v5e/v6e).
        if rows >= 2 * sublane_mult and rows % (2 * sublane_mult) == 0:
            return rows // 2
        return rows  # block dim == full array dim: always a legal block shape
    return cap


def normal_head_forward(x, *, num_outputs, init_std, min_std,
                        min_kernel_elements=_SMALL_BYPASS_ELEMENTS):
    """Returns (mean, std) of the diagonal Normal; the distribution's mode is `mean`."""
    A = num_outputs
    assert x.shape[-1] == 2 * A, "last dim must be 2 * num_outputs"
    assert math.exp(init_std) > 1.0, "init_std must satisfy exp(init_std) > 1"
    raw_init_std = float(math.log(math.exp(init_std) - 1.0))

    lead = x.shape[:-1]
    rows = int(math.prod(lead)) if lead else 1
    x2d = x.reshape(rows, 2 * A)

    # ---- Small-size bypass: one XLA fusion, no pallas dispatch. -------------
    if rows * A < min_kernel_elements:
        mean = x2d[:, :A]
        std = jax.nn.softplus(x2d[:, A:] + raw_init_std) + min_std
        return mean.reshape(*lead, A), std.reshape(*lead, A).astype(x.dtype)

    # ---- Fused Pallas kernel: one call, two outputs (mean, std). ------------
    itemsize = x.dtype.itemsize
    sublane_mult = max(8, 32 // itemsize)              # 8 f32 / 16 bf16 / 32 int8
    per_row_bytes = 4 * A * itemsize                   # x row (2A) + mean row + std row
    tb = _pick_tile_rows(rows, per_row_bytes, sublane_mult, _target_tile_bytes())
    grid = (pl.cdiv(rows, tb),)

    kernel = functools.partial(
        _normal_head_kernel,
        num_outputs=A,
        raw_init_std=raw_init_std,
        min_std=float(min_std),
    )
    cost = pl.CostEstimate(
        flops=5 * rows * A,
        transcendentals=2 * rows * A,
        bytes_accessed=4 * rows * A * itemsize,
    )
    mean, std = pl.pallas_call(
        kernel,
        out_shape=(
            jax.ShapeDtypeStruct((rows, A), x.dtype),
            jax.ShapeDtypeStruct((rows, A), x.dtype),
        ),
        grid=grid,
        in_specs=[pl.BlockSpec((tb, 2 * A), lambda i: (i, 0))],
        out_specs=(
            pl.BlockSpec((tb, A), lambda i: (i, 0)),
            pl.BlockSpec((tb, A), lambda i: (i, 0)),
        ),
        compiler_params=pltpu.CompilerParams(dimension_semantics=("parallel",)),
        cost_estimate=cost,
    )(x2d)
    return mean.reshape(*lead, A), std.reshape(*lead, A)


if __name__ == "__main__":
    init_std = 1.0
    min_std = 0.01
    raw_init_std = math.log(math.exp(init_std) - 1.0)
    key = jax.random.PRNGKey(0)

    def ref(x, A):
        xf = x.astype(jnp.float32)
        return xf[:, :A], jax.nn.softplus(xf[:, A:] + raw_init_std) + min_std

    # Case 1: tiny RL-style head (B=8, A=16) -> small-size bypass (plain XLA fusion).
    B1, A1 = 8, 16
    x1 = jax.random.normal(key, (B1, 2 * A1), dtype=jnp.float32)
    mean1, std1 = normal_head_forward(x1, num_outputs=A1, init_std=init_std, min_std=min_std)

    # Case 2: small unaligned head forced through the Pallas kernel (masked-store path,
    # 2-block grid).
    B2, A2 = 64, 16
    x2 = jax.random.normal(jax.random.fold_in(key, 1), (B2, 2 * A2), dtype=jnp.float32)
    mean2, std2 = normal_head_forward(
        x2, num_outputs=A2, init_std=init_std, min_std=min_std, min_kernel_elements=0)

    # Case 3: lane-aligned bf16 head through the Pallas kernel (16-row sublane packing,
    # 2-block "parallel" grid).
    B3, A3 = 256, 128
    x3 = jax.random.normal(jax.random.fold_in(key, 2), (B3, 2 * A3), dtype=jnp.bfloat16)
    mean3, std3 = normal_head_forward(
        x3, num_outputs=A3, init_std=init_std, min_std=min_std, min_kernel_elements=0)

    jax.block_until_ready((mean1, std1, mean2, std2, mean3, std3))

    rm1, rs1 = ref(x1, A1)
    rm2, rs2 = ref(x2, A2)
    rm3, rs3 = ref(x3, A3)
    assert jnp.allclose(mean1, rm1, atol=1e-5, rtol=1e-5)
    assert jnp.allclose(std1, rs1, atol=1e-5, rtol=1e-5)
    assert jnp.allclose(mean2, rm2, atol=1e-5, rtol=1e-5)
    assert jnp.allclose(std2, rs2, atol=1e-5, rtol=1e-5)
    # bf16 storage: mean is a bit-exact copy; std matches the f32 reference to bf16 precision.
    assert jnp.array_equal(mean3, x3[:, :A3])
    assert jnp.allclose(std3.astype(jnp.float32), rs3, atol=2e-2, rtol=2e-2)

    print("KERNEL_OK")
</pallas_src>

<mosaic_0001>
module attributes {stable_mosaic.version = 11 : i64} {
  func.func @_normal_head_kernel(%arg0: i32, %arg1: memref<32x32xf32, #tpu.memory_space<vmem>>, %arg2: memref<32x16xf32, #tpu.memory_space<vmem>>, %arg3: memref<32x16xf32, #tpu.memory_space<vmem>>) attributes {dimension_semantics = [#tpu.dimension_semantics<parallel>], iteration_bounds = array<i64: 2>, scalar_prefetch = 0 : i64, scratch_operands = 0 : i64, tpu.core_type = #tpu.core_type<tc>, window_params = [{transform_indices = @transform_0, window_bounds = array<i64: 32, 32>}, {transform_indices = @transform_1, window_bounds = array<i64: 32, 16>}, {transform_indices = @transform_2, window_bounds = array<i64: 32, 16>}]} {
    %c0 = arith.constant 0 : index
    %c0_0 = arith.constant 0 : index
    %0 = vector.load %arg1[%c0, %c0_0] : memref<32x32xf32, #tpu.memory_space<vmem>>, vector<32x16xf32>
    %c0_1 = arith.constant 0 : index
    %c0_2 = arith.constant 0 : index
    %1 = vector.load %arg2[%c0_1, %c0_2] : memref<32x16xf32, #tpu.memory_space<vmem>>, vector<32x16xf32>
    tpu.vector_store %arg2[%c0_1, %c0_2], %0 {strides = array<i32>} : memref<32x16xf32, #tpu.memory_space<vmem>>, vector<32x16xf32>,
    %c0_3 = arith.constant 0 : index
    %c16 = arith.constant 16 : index
    %2 = vector.load %arg1[%c0_3, %c16] : memref<32x32xf32, #tpu.memory_space<vmem>>, vector<32x16xf32>
    %cst = arith.constant 0.541324854 : f32
    %3 = vector.broadcast %cst : f32 to vector<32x16xf32>
    %4 = arith.addf %2, %3 : vector<32x16xf32>
    %cst_4 = arith.constant 0.000000e+00 : f32
    %5 = vector.broadcast %cst_4 : f32 to vector<32x16xf32>
    %6 = arith.maximumf %4, %5 : vector<32x16xf32>
    %7 = math.absf %4 : vector<32x16xf32>
    %cst_5 = arith.constant 0.000000e+00 : f32
    %8 = vector.broadcast %cst_5 : f32 to vector<32x16xf32>
    %9 = arith.subf %8, %7 : vector<32x16xf32>
    %10 = math.exp %9 : vector<32x16xf32>
    %11 = math.log1p %10 : vector<32x16xf32>
    %12 = arith.addf %6, %11 : vector<32x16xf32>
    %cst_6 = arith.constant 0.00999999977 : f32
    %13 = vector.broadcast %cst_6 : f32 to vector<32x16xf32>
    %14 = arith.addf %12, %13 : vector<32x16xf32>
    %c0_7 = arith.constant 0 : index
    %c0_8 = arith.constant 0 : index
    %15 = vector.load %arg3[%c0_7, %c0_8] : memref<32x16xf32, #tpu.memory_space<vmem>>, vector<32x16xf32>
    tpu.vector_store %arg3[%c0_7, %c0_8], %14 {strides = array<i32>} : memref<32x16xf32, #tpu.memory_space<vmem>>, vector<32x16xf32>,
    return
  }
  func.func @transform_0(%arg0: i32) -> (i32, i32) {
    %c0_i32 = arith.constant 0 : i32
    %c0_i32_0 = arith.constant 0 : i32
    return %arg0, %c0_i32 : i32, i32
  }
  func.func @transform_1(%arg0: i32) -> (i32, i32) {
    %c0_i32 = arith.constant 0 : i32
    %c0_i32_0 = arith.constant 0 : i32
    return %arg0, %c0_i32 : i32, i32
  }
  func.func @transform_2(%arg0: i32) -> (i32, i32) {
    %c0_i32 = arith.constant 0 : i32
    %c0_i32_0 = arith.constant 0 : i32
    return %arg0, %c0_i32 : i32, i32
  }
}

</mosaic_0001>

<bundles_post_ra>
// kernel: tpu_custom_call.1
= control target key start
LH: loop header
LB: loop body
LE: loop exit
PB: predicated region body
PF: predicated region fallthrough
CT: control target
= control target key end

     0   :  { %s414_s9 = smov 0   ;;  %s469_s0 = inlined_call_operand.vmem [shape: f32[64,32], index: 0, kind: input, shape index: {}]   ;;  %s470_s1 = inlined_call_operand.vmem [shape: f32[64,16], index: 1, kind: output, shape index: {0}]   ;;  %s471_s2 = inlined_call_operand.vmem [shape: f32[64,16], index: 2, kind: output, shape index: {1}]  }
   0x1 LB: > { %s352_s10 = sadd.s32 4294967295, %s396_s9   ;;  %p356_p0 = scmp.ge.s32.totalorder %s396_s9, 1  ;;  %s396_s9 = sphi %s414_s9, %s13_s9  }
   0x2   : > { %p116_p1 = scmp.lt.s32.totalorder %s396_s9, 3 }
   0x4   : > { %p117_p2 = pnand %p356_p0, %p116_p1 }
   0x5   : > { %s357_s11 = sshll.u32 (!%p117_p2), %s352_s10, 2  ;;  %s398_s19 = smov (!%p117_p2), 112  }
   0x6   : > { %120 = sbr.rel (%p117_p2) target bundleno = 171 (0xab), region = 24  ;;  %p144_p3 = scmp.lt.s32.totalorder (!%p117_p2), %s357_s11, 7 }
   0xb   : > { %s475_s11 = smov (!%p144_p3, %s357_s11), 7  ;;  %vm165_vm0 = vcmask 130048  }
   0xc   : > { %s422_s12 = sshll.u32 %s475_s11, 3 }
   0xd   : > { %s147_s15 = scalar_lea.vmem %s469_s0, %s422_s12  ;;  %s153_s18 = scalar_lea.vmem %s470_s1, %s422_s12 }
   0xe   : > { %v170_v0 = vld [vmem:[%s147_s15] sm:$0xff]  ;;  %v172_v1 = vld [vmem:[%s147_s15 + $0x10] sm:$0xff]  ;;  %v171_v2 = vld [vmem:[%s147_s15 + $0x8] sm:$0xff]  ;;  %s159_s22 = scalar_lea.vmem %s471_s2, %s422_s12 }
   0xf   : > { %v428_v3 = vadd.f32 0.54132485, %v170_v0  ;;  %v430_v4 = vadd.f32 0.54132485, %v172_v1  ;;  %v432_v5 = vadd.f32 0.54132485, %v171_v2 }
  0x10   : > { %v173_v6 = vld [vmem:[%s147_s15 + $0x18] sm:$0xff]  ;;  %166 = vst.msk [vmem:[%s153_s18] sm:$0xff] %vm165_vm0, %v170_v0 }
  0x11   : > { %v182_v7 = vand.u32 2147483647, %v428_v3  ;;  %v184_v8 = vand.u32 2147483647, %v430_v4  ;;  %v183_v9 = vand.u32 2147483647, %v432_v5 }
  0x12   : > { %v437_v10 = vadd.f32 0.54132485, %v173_v6  ;;  %167 = vst.msk [vmem:[%s153_s18 + $0x8] sm:$0xff] %vm165_vm0, %v171_v2  ;;  %v178_v41 = vmax.f32 %v428_v3, 0.0  ;;  %v180_v46 = vmax.f32 %v430_v4, 0.0  ;;  %v179_v57 = vmax.f32 %v432_v5, 0.0 }
  0x13   : > { %v186_v11 = vsub.f32 0.0, %v182_v7  ;;  %v188_v12 = vsub.f32 0.0, %v184_v8  ;;  %v187_v13 = vsub.f32 0.0, %v183_v9  ;;  %168 = vst.msk [vmem:[%s153_s18 + $0x10] sm:$0xff] %vm165_vm0, %v172_v1 }
  0x14   : > { %v185_v14 = vand.u32 2147483647, %v437_v10  ;;  %169 = vst.msk [vmem:[%s153_s18 + $0x18] sm:$0xff] %vm165_vm0, %v173_v6  ;;  %v181_v60 = vmax.f32 %v437_v10, 0.0 }
  0x15   : > { %v190_v15 = vmul.f32 1.442695, %v186_v11  ;;  %v194_v16 = vmul.f32 1.442695, %v188_v12  ;;  %v192_v17 = vmul.f32 1.442695, %v187_v13 }
  0x16   : > { %v189_v18 = vsub.f32 0.0, %v185_v14 }
  0x17   : > { %374 = vpow2.f32 %v190_v15 }
  0x18   : > { %376 = vpow2.f32 %v194_v16  ;;  %v196_v19 = vmul.f32 1.442695, %v189_v18 }
  0x19   : > { %378 = vpow2.f32 %v192_v17 }
  0x1a   : > { %380 = vpow2.f32 %v196_v19 }
  0x1d   : > { %v375_v20 = vpop.eup %374 }
  0x1e   : > { %v377_v21 = vpop.eup %376  ;;  %v198_v22 = vadd.f32 1.0, %v375_v20  ;;  %v201_v23 = vmul.f32 -0.5, %v375_v20  ;;  %v204_v31 = vand.u32 2147483647, %v375_v20 }
  0x1f   : > { %v379_v24 = vpop.eup %378  ;;  %v216_v25 = vadd.f32 1.0, %v377_v21  ;;  %v219_v26 = vmul.f32 -0.5, %v377_v21  ;;  %v222_v34 = vand.u32 2147483647, %v377_v21 }
  0x20   : > { %v381_v27 = vpop.eup %380  ;;  %382 = vlog2.f32 %v198_v22  ;;  %v207_v28 = vadd.f32 1.0, %v379_v24  ;;  %v202_v29 = vadd.f32 1.0, %v201_v23  ;;  %v210_v30 = vmul.f32 -0.5, %v379_v24 }
  0x21   : > { %384 = vlog2.f32 %v216_v25  ;;  %v220_v32 = vadd.f32 1.0, %v219_v26  ;;  %v225_v33 = vadd.f32 1.0, %v381_v27  ;;  %v228_v36 = vmul.f32 -0.5, %v381_v27 }
  0x22   : > { %386 = vlog2.f32 %v207_v28  ;;  %v211_v35 = vadd.f32 1.0, %v210_v30  ;;  %v213_v37 = vand.u32 2147483647, %v379_v24  ;;  %v203_v38 = vmul.f32 %v375_v20, %v202_v29 }
  0x23   : > { %388 = vlog2.f32 %v225_v33  ;;  %v229_v39 = vadd.f32 1.0, %v228_v36  ;;  %vm205_vm1 = vcmp.lt.f32.partialorder %v204_v31, 0.0004427343  ;;  %v221_v42 = vmul.f32 %v377_v21, %v220_v32 }
  0x24   : > { %v231_v43 = vand.u32 2147483647, %v381_v27  ;;  %vm223_vm2 = vcmp.lt.f32.partialorder %v222_v34, 0.0004427343  ;;  %v212_v47 = vmul.f32 %v379_v24, %v211_v35  ;;  %vm450_vm3 = vcmp.lt.f32.partialorder %v213_v37, 0.0004427343 }
  0x25   : > { %v230_v53 = vmul.f32 %v381_v27, %v229_v39 }
  0x26   : > { %v383_v40 = vpop.eup %382  ;;  %vm232_vm4 = vcmp.lt.f32.partialorder %v231_v43, 0.0004427343 }
  0x27   : > { %v385_v44 = vpop.eup %384  ;;  %v200_v45 = vmul.f32 0.6931472, %v383_v40 }
  0x28   : > { %v387_v48 = vpop.eup %386  ;;  %v218_v49 = vmul.f32 0.6931472, %v385_v44 }
  0x29   : > { %v206_v51 = vsel %vm205_vm1, %v203_v38, %v200_v45  ;;  %v209_v52 = vmul.f32 0.6931472, %v387_v48  ;;  %v389_v54 = vpop.eup %388 }
  0x2a   : > { %v234_v55 = vadd.f32 %v206_v51, %v178_v41  ;;  %v224_v56 = vsel %vm223_vm2, %v221_v42, %v218_v49  ;;  %v227_v61 = vmul.f32 0.6931472, %v389_v54 }
  0x2b   : > { %v236_v58 = vadd.f32 %v224_v56, %v180_v46  ;;  %v215_v59 = vsel %vm450_vm3, %v212_v47, %v209_v52 }
  0x2c   : > { %v238_v62 = vadd.f32 0.01, %v234_v55  ;;  %v233_v0 = vsel %vm232_vm4, %v230_v53, %v227_v61  ;;  %v235_v1 = vadd.f32 %v215_v59, %v179_v57 }
  0x2d   : > { %v240_v63 = vadd.f32 0.01, %v236_v58  ;;  %v237_v2 = vadd.f32 %v233_v0, %v181_v60 }
  0x2e   : > { %246 = vrot.lane.b32.xlu0 %v238_v62, %s398_s19  ;;  %v239_v3 = vadd.f32 0.01, %v235_v1 }
  0x2f   : > { %250 = vrot.lane.b32.xlu1 %v240_v63, %s398_s19  ;;  %v241_v4 = vadd.f32 0.01, %v237_v2 }
  0x36   : > { %248 = vrot.lane.b32.xlu0 %v239_v3, %s398_s19 }
  0x37   : > { %252 = vrot.lane.b32.xlu1 %v241_v4, %s398_s19 }
  0xa0   : > { %v247_v5 = vpop.permute.xlu0 %246 }
  0xa1   : > { %258 = vst.msk [vmem:[%s159_s22] sm:$0xff] %vm165_vm0, %v247_v5  ;;  %v251_v6 = vpop.permute.xlu1 %250 }
  0xa2   : > { %260 = vst.msk [vmem:[%s159_s22 + $0x10] sm:$0xff] %vm165_vm0, %v251_v6 }
  0xa8   : > { %v249_v7 = vpop.permute.xlu0 %248 }
  0xa9   : > { %259 = vst.msk [vmem:[%s159_s22 + $0x8] sm:$0xff] %vm165_vm0, %v249_v7  ;;  %v253_v8 = vpop.permute.xlu1 %252 }
  0xaa   : > { %261 = vst.msk [vmem:[%s159_s22 + $0x18] sm:$0xff] %vm165_vm0, %v253_v8 }
  0xab PF: > { %s13_s9 = sadd.s32 1, %s396_s9  }
  0xac   : > { %p10_p4 = scmp.ge.s32.totalorder %s13_s9, 4  }
  0xae   :  { %12 = sbr.rel (!%p10_p4) target bundleno = 1 (0x1), region = 66 }

</bundles_post_ra>
